<compile_context>
chip_gen: v7x
topology: tpu7x:2x2x1
jax: 0.10.0
libtpu: 0.0.40
codegen_flags: <defaults>
</compile_context>

<pallas_src>
import functools

import jax
import jax.numpy as jnp
from jax.experimental import pallas as pl
from jax.experimental.pallas import tpu as pltpu


def _round_up(x, m):
    return (x + m - 1) // m * m


def _pick_tile(n_p, cap):
    """Largest multiple of 128 that divides n_p and is <= cap (at least 128)."""
    cap = max(128, min(cap, n_p))
    best = 128
    t = 256
    while t <= cap:
        if n_p % t == 0:
            best = t
        t += 128
    return best


def _gcn_reference(text, adj, weight, bias=None):
    """Pure-JAX reference / small-problem fallback (f32)."""
    hidden = jnp.matmul(text, weight)
    denom = jnp.sum(adj, axis=2, keepdims=True) + 1.0
    out = jnp.matmul(adj, hidden) / denom
    if bias is not None:
        out = out + bias
    return out


def _gcn_kernel(hid_ref, adj_ref, b_ref, out_ref, acc_ref, *, den_col):
    # hid_ref: (TK, F_out_p) bf16 -- column `den_col` is all-ones, so the one
    #          MXU pass also produces the row-sum denominator for free.
    # adj_ref: (TM, TK) in its HBM dtype (f32 or bf16); cast per-tile on VPU.
    # b_ref:   (1, F_out_p) f32
    # out_ref: (TM, F_out_p)
    # acc_ref: (TM, F_out_p) f32 persistent accumulator.
    k = pl.program_id(2)

    @pl.when(k == 0)
    def _init():
        acc_ref[...] = jnp.zeros_like(acc_ref)

    acc_ref[...] += jnp.dot(adj_ref[...].astype(jnp.bfloat16), hid_ref[...],
                            preferred_element_type=jnp.float32)

    @pl.when(k == pl.num_programs(2) - 1)
    def _finalize():
        acc = acc_ref[...]
        # Extract the row sums from the ones column (epilogue-only XLU work).
        col = jax.lax.broadcasted_iota(jnp.int32, acc.shape, 1)
        den = jnp.sum(jnp.where(col == den_col, acc, 0.0), axis=-1,
                      keepdims=True) + 1.0
        inv = pl.reciprocal(den, approx=False)  # once per row tile: exact is free
        out_ref[...] = (acc * inv + b_ref[...]).astype(out_ref.dtype)


def graph_convolution(text, adj, weight, bias=None, *, max_tm=1024,
                      max_tk=1024, out_dtype=None, force_pallas=False,
                      min_pallas_nodes=128):
    """text: [B, N, F_in], adj: [B, N, N] (f32 or bf16), weight: [F_in, F_out],
    bias: [F_out] or None."""
    B, N, F_in = text.shape
    F_out = weight.shape[1]
    if out_dtype is None:
        out_dtype = text.dtype

    # Small-problem fallback: XLA wins outright below ~128 nodes.
    if not force_pallas and N < min_pallas_nodes:
        return _gcn_reference(text, adj, weight, bias).astype(out_dtype)

    # hidden = text @ W precomputed once in XLA (cheap vs. the adj stream).
    hidden = jnp.matmul(text.astype(jnp.float32), weight.astype(jnp.float32))

    # Lane-dense output with a guaranteed spare column: column `F_out` of
    # hidden is set to 1.0 so adj @ hidden yields row sums in that column.
    den_col = F_out
    F_out_p = _round_up(F_out + 1, 128)
    hidden = jnp.pad(hidden, ((0, 0), (0, 0), (0, F_out_p - F_out)))
    hidden = hidden.at[:, :, den_col].set(1.0)

    # Pad N only to a multiple of 128, and only when needed: for 128-aligned N
    # the dominant adj stream goes to the kernel untouched (no extra HBM pass).
    N_p = _round_up(N, 128)
    if N_p != N:
        adj = jnp.pad(adj, ((0, 0), (0, N_p - N), (0, N_p - N)))
        hidden = jnp.pad(hidden, ((0, 0), (0, N_p - N), (0, 0)))
    hidden_b = hidden.astype(jnp.bfloat16)

    if bias is None:
        bias = jnp.zeros((F_out,), dtype=jnp.float32)
    bias2d = jnp.pad(bias.astype(jnp.float32),
                     (0, F_out_p - F_out)).reshape(1, F_out_p)

    # Tile sizes: largest 128-multiples dividing N_p (zero tail waste).  With a
    # single batch, cap TM so the row-tile axis has >=2 blocks (v7x: 2 TCs).
    tm_cap = max_tm
    if B == 1:
        tm_cap = min(tm_cap, max(128, N_p // 2))
    TM = _pick_tile(N_p, tm_cap)
    TK = _pick_tile(N_p, max_tk)

    grid = (B, N_p // TM, N_p // TK)

    # VMEM cap from the actual tile footprint + headroom (keeps room on v7x's
    # 64 MiB/TC while allowing large tiles on v5e/v6e).
    adj_bytes = TM * TK * jnp.dtype(adj.dtype).itemsize
    hid_bytes = TK * F_out_p * 2
    out_bytes = TM * F_out_p * jnp.dtype(out_dtype).itemsize
    acc_bytes = TM * F_out_p * 4
    footprint = 2 * (adj_bytes + hid_bytes + out_bytes + F_out_p * 4) + acc_bytes
    vmem_limit = int(min(max(2 * footprint + (4 << 20), 24 << 20), 64 << 20))

    kernel = functools.partial(_gcn_kernel, den_col=den_col)

    out_p = pl.pallas_call(
        kernel,
        out_shape=jax.ShapeDtypeStruct((B, N_p, F_out_p), out_dtype),
        grid_spec=pltpu.PrefetchScalarGridSpec(
            num_scalar_prefetch=0,
            grid=grid,
            in_specs=[
                # hidden k-slab (TK, F_out_p); batch dim squeezed.
                pl.BlockSpec((None, TK, F_out_p), lambda b, i, k: (b, k, 0)),
                # adj tile (TM, TK); batch dim squeezed; native dtype.
                pl.BlockSpec((None, TM, TK), lambda b, i, k: (b, i, k)),
                # bias shared across the grid.
                pl.BlockSpec((1, F_out_p), lambda b, i, k: (0, 0)),
            ],
            out_specs=pl.BlockSpec((None, TM, F_out_p),
                                   lambda b, i, k: (b, i, 0)),
            scratch_shapes=[
                pltpu.VMEM((TM, F_out_p), jnp.float32),  # adj@hidden accumulator
            ],
        ),
        compiler_params=pltpu.CompilerParams(
            dimension_semantics=("parallel", "parallel", "arbitrary"),
            vmem_limit_bytes=vmem_limit,
        ),
    )(hidden_b, adj, bias2d)

    # Strip N / F_out padding (the denominator column lives past F_out).
    return out_p[:, :N, :F_out]


if __name__ == "__main__":
    key = jax.random.PRNGKey(0)
    k1, k2, k3, k4, k5, k6, k7, k8 = jax.random.split(key, 8)

    # Case 1: the module's nominal small shapes, forced through the Pallas path.
    B, N, F_in, F_out = 2, 8, 16, 32
    text = jax.random.normal(k1, (B, N, F_in), dtype=jnp.float32)
    adj = jax.random.uniform(k2, (B, N, N), dtype=jnp.float32)  # non-negative adjacency
    weight = jax.random.normal(k3, (F_in, F_out), dtype=jnp.float32) * 0.1
    bias = jax.random.normal(k4, (F_out,), dtype=jnp.float32) * 0.1

    out = jax.block_until_ready(
        graph_convolution(text, adj, weight, bias, force_pallas=True))
    ref = _gcn_reference(text, adj, weight, bias)
    assert out.shape == (B, N, F_out)
    assert jnp.allclose(out, ref, atol=2e-2, rtol=2e-2), float(
        jnp.max(jnp.abs(out - ref)))

    # Case 2: tiled path -- non-128-aligned N and a multi-step k reduction.
    B2, N2, F_in2, F_out2 = 2, 200, 48, 64
    text2 = jax.random.normal(k5, (B2, N2, F_in2), dtype=jnp.float32)
    adj2 = jax.random.uniform(k6, (B2, N2, N2), dtype=jnp.float32)
    weight2 = jax.random.normal(k7, (F_in2, F_out2), dtype=jnp.float32) * 0.1
    bias2 = jax.random.normal(k8, (F_out2,), dtype=jnp.float32) * 0.1

    out2 = jax.block_until_ready(
        graph_convolution(text2, adj2, weight2, bias2, max_tm=128, max_tk=128))
    ref2 = _gcn_reference(text2, adj2, weight2, bias2)
    assert out2.shape == (B2, N2, F_out2)
    assert jnp.allclose(out2, ref2, atol=2e-2, rtol=2e-2), float(
        jnp.max(jnp.abs(out2 - ref2)))

    print("KERNEL_OK")
</pallas_src>

<mosaic_0001>
module attributes {stable_mosaic.version = 11 : i64} {
  func.func @_gcn_kernel(%arg0: i32, %arg1: i32, %arg2: i32, %arg3: memref<1x128x128xbf16, #tpu.memory_space<vmem>>, %arg4: memref<1x128x128xf32, #tpu.memory_space<vmem>>, %arg5: memref<1x128xf32, #tpu.memory_space<vmem>>, %arg6: memref<1x128x128xf32, #tpu.memory_space<vmem>>, %arg7: memref<128x128xf32, #tpu.memory_space<vmem>>) attributes {dimension_semantics = [#tpu.dimension_semantics<parallel>, #tpu.dimension_semantics<parallel>, #tpu.dimension_semantics<arbitrary>], iteration_bounds = array<i64: 2, 1, 1>, scalar_prefetch = 0 : i64, scratch_operands = 1 : i64, tpu.core_type = #tpu.core_type<tc>, window_params = [{transform_indices = @transform_0, window_bounds = array<i64: 1, 128, 128>}, {transform_indices = @transform_1, window_bounds = array<i64: 1, 128, 128>}, {pipeline_mode = #tpu.pipeline_mode<synchronous>, transform_indices = @transform_2, window_bounds = array<i64: 1, 128>}, {transform_indices = @transform_3, window_bounds = array<i64: 1, 128, 128>}]} {
    %c0_i32 = arith.constant 0 : i32
    %0 = arith.cmpi eq, %arg2, %c0_i32 : i32
    %1 = arith.extui %0 : i1 to i32
    %c0_i32_0 = arith.constant 0 : i32
    %2 = arith.cmpi ne, %1, %c0_i32_0 : i32
    scf.if %2 {
      %cst_12 = arith.constant 0.000000e+00 : f32
      %15 = vector.broadcast %cst_12 : f32 to vector<128x128xf32>
      %c0_13 = arith.constant 0 : index
      %c0_14 = arith.constant 0 : index
      %16 = vector.load %arg7[%c0_13, %c0_14] : memref<128x128xf32, #tpu.memory_space<vmem>>, vector<128x128xf32>
      tpu.vector_store %arg7[%c0_13, %c0_14], %15 {strides = array<i32>} : memref<128x128xf32, #tpu.memory_space<vmem>>, vector<128x128xf32>,
    } else {
    }
    %c0 = arith.constant 0 : index
    %c0_1 = arith.constant 0 : index
    %3 = vector.load %arg7[%c0, %c0_1] : memref<128x128xf32, #tpu.memory_space<vmem>>, vector<128x128xf32>
    %c0_2 = arith.constant 0 : index
    %c0_3 = arith.constant 0 : index
    %c0_4 = arith.constant 0 : index
    %4 = vector.load %arg4[%c0_2, %c0_3, %c0_4] : memref<1x128x128xf32, #tpu.memory_space<vmem>>, vector<1x128x128xf32>
    %5 = vector.shape_cast %4 : vector<1x128x128xf32> to vector<128x128xf32>
    %6 = arith.truncf %5 : vector<128x128xf32> to vector<128x128xbf16>
    %c0_5 = arith.constant 0 : index
    %c0_6 = arith.constant 0 : index
    %c0_7 = arith.constant 0 : index
    %7 = vector.load %arg3[%c0_5, %c0_6, %c0_7] : memref<1x128x128xbf16, #tpu.memory_space<vmem>>, vector<1x128x128xbf16>
    %8 = vector.shape_cast %7 : vector<1x128x128xbf16> to vector<128x128xbf16>
    %cst = arith.constant dense<0.000000e+00> : vector<128x128xf32>
    %9 = tpu.matmul %6, %8, %cst {dimension_numbers = #tpu.dot_dimension_numbers<[1], [0], [0], [1], [0, 0, 1, 1], [], []>} : vector<128x128xbf16>, vector<128x128xbf16>, vector<128x128xf32> -> vector<128x128xf32>
    %10 = arith.addf %3, %9 : vector<128x128xf32>
    %c0_8 = arith.constant 0 : index
    %c0_9 = arith.constant 0 : index
    %11 = vector.load %arg7[%c0_8, %c0_9] : memref<128x128xf32, #tpu.memory_space<vmem>>, vector<128x128xf32>
    tpu.vector_store %arg7[%c0_8, %c0_9], %10 {strides = array<i32>} : memref<128x128xf32, #tpu.memory_space<vmem>>, vector<128x128xf32>,
    %c0_i32_10 = arith.constant 0 : i32
    %12 = arith.cmpi eq, %arg2, %c0_i32_10 : i32
    %13 = arith.extui %12 : i1 to i32
    %c0_i32_11 = arith.constant 0 : i32
    %14 = arith.cmpi ne, %13, %c0_i32_11 : i32
    scf.if %14 {
      %c0_12 = arith.constant 0 : index
      %c0_13 = arith.constant 0 : index
      %15 = vector.load %arg7[%c0_12, %c0_13] : memref<128x128xf32, #tpu.memory_space<vmem>>, vector<128x128xf32>
      %16 = tpu.iota {dimensions = array<i32: 1>} : vector<128x128xi32>
      %c32_i32 = arith.constant 32 : i32
      %17 = vector.broadcast %c32_i32 : i32 to vector<128x128xi32>
      %18 = arith.cmpi eq, %16, %17 : vector<128x128xi32>
      %cst_14 = arith.constant 0.000000e+00 : f32
      %19 = vector.broadcast %cst_14 : f32 to vector<128x128xf32>
      %20 = arith.select %18, %15, %19 : vector<128x128xi1>, vector<128x128xf32>
      %cst_15 = arith.constant dense<0.000000e+00> : vector<128xf32>
      %21 = vector.multi_reduction <add>, %20, %cst_15 [1] : vector<128x128xf32> to vector<128xf32>
      %22 = vector.shape_cast %21 : vector<128xf32> to vector<128x1xf32>
      %cst_16 = arith.constant 1.000000e+00 : f32
      %23 = vector.broadcast %cst_16 : f32 to vector<128x1xf32>
      %24 = arith.addf %22, %23 : vector<128x1xf32>
      %25 = tpu.reciprocal %24 : vector<128x1xf32> -> vector<128x1xf32>
      %26 = vector.broadcast %25 : vector<128x1xf32> to vector<128x128xf32>
      %27 = arith.mulf %15, %26 : vector<128x128xf32>
      %c0_17 = arith.constant 0 : index
      %c0_18 = arith.constant 0 : index
      %28 = vector.load %arg5[%c0_17, %c0_18] : memref<1x128xf32, #tpu.memory_space<vmem>>, vector<1x128xf32>
      %29 = vector.broadcast %28 : vector<1x128xf32> to vector<128x128xf32>
      %30 = arith.addf %27, %29 : vector<128x128xf32>
      %c0_19 = arith.constant 0 : index
      %c0_20 = arith.constant 0 : index
      %c0_21 = arith.constant 0 : index
      %31 = vector.load %arg6[%c0_19, %c0_20, %c0_21] : memref<1x128x128xf32, #tpu.memory_space<vmem>>, vector<1x128x128xf32>
      %32 = vector.shape_cast %31 : vector<1x128x128xf32> to vector<128x128xf32>
      %33 = vector.shape_cast %30 : vector<128x128xf32> to vector<1x128x128xf32>
      tpu.vector_store %arg6[%c0_19, %c0_20, %c0_21], %33 {strides = array<i32>} : memref<1x128x128xf32, #tpu.memory_space<vmem>>, vector<1x128x128xf32>,
    } else {
    }
    return
  }
  func.func @transform_0(%arg0: i32, %arg1: i32, %arg2: i32) -> (i32, i32, i32) {
    %c0_i32 = arith.constant 0 : i32
    %c0_i32_0 = arith.constant 0 : i32
    return %arg0, %arg2, %c0_i32 : i32, i32, i32
  }
  func.func @transform_1(%arg0: i32, %arg1: i32, %arg2: i32) -> (i32, i32, i32) {
    %c0_i32 = arith.constant 0 : i32
    return %arg0, %arg1, %arg2 : i32, i32, i32
  }
  func.func @transform_2(%arg0: i32, %arg1: i32, %arg2: i32) -> (i32, i32) {
    %c0_i32 = arith.constant 0 : i32
    %c0_i32_0 = arith.constant 0 : i32
    %c0_i32_1 = arith.constant 0 : i32
    return %c0_i32, %c0_i32_0 : i32, i32
  }
  func.func @transform_3(%arg0: i32, %arg1: i32, %arg2: i32) -> (i32, i32, i32) {
    %c0_i32 = arith.constant 0 : i32
    %c0_i32_0 = arith.constant 0 : i32
    return %arg0, %arg1, %c0_i32 : i32, i32, i32
  }
}

</mosaic_0001>

<bundles_post_ra>
// kernel: tpu_custom_call.1
= control target key start
LH: loop header
LB: loop body
LE: loop exit
PB: predicated region body
PF: predicated region fallthrough
CT: control target
= control target key end

     0   :  { %8 = vsyncpa [#allocation4], 0  ;;  %s1570_s0 = inlined_call_operand.hbm [shape: bf16[2,128,128], index: 0, kind: input, shape index: {}]   ;;  %s1571_s1 = inlined_call_operand.hbm [shape: f32[2,128,128], index: 1, kind: input, shape index: {}]   ;;  %s1572_s2 = inlined_call_operand.vmem [shape: f32[1,128], index: 2, kind: input, shape index: {}]   ;;  %s1573_s3 = inlined_call_operand.hbm [shape: f32[2,128,128], index: 3, kind: output, shape index: {}]  }
   0x1   :  { %10 = vsyncpa [#allocation4 + $0x1], 0 }
   0x2   :  { %11 = vsyncpa [#allocation7], 0 }
   0x3   :  { %13 = vsyncpa [#allocation7 + $0x1], 0 }
   0x4   :  { %14 = vsyncpa [#allocation5], 0 }
   0x5   :  { %16 = vsyncpa [#allocation5 + $0x1], 0  ;;  %s1193_s12 = smov 0   ;;  %s1195_s13 = smov 0  }
   0x6   :  { %s1197_s14 = smov 0   ;;  %s1199_s15 = smov 0  }
   0x7   :  { %s1201_s16 = smov 0   ;;  %s1203_s17 = smov 0  }
   0x8 LB: > { %s808_s18 = sadd.s32 4294967295, %s1162_s17   ;;  %s809_s19 = sadd.s32 4294967294, %s1162_s17   ;;  %s1162_s17 = sphi %s1203_s17, %s22_s17   ;;  %s1158_s16 = sphi %s1201_s16, %s1591_s16   ;;  %s1154_s15 = sphi %s1199_s15, %s1590_s15   ;;  %s1150_s14 = sphi %s1197_s14, %s1589_s14   ;;  %s1146_s13 = sphi %s1195_s13, %s1588_s13   ;;  %s1142_s12 = sphi %s1193_s12, %s1587_s12  }
   0x9   : > { %s41_s20 = sadd.s32 1, %s1158_s16  ;;  %s50_s21 = sadd.s32 1, %s1150_s14 }
   0xa   : > { %p43_p0 = scmp.ge.s32.totalorder %s41_s20, 2  ;;  %p57_p1 = scmp.ne.s32.totalorder %s1150_s14, %s1146_s13 }
   0xb   : > { %p58_p2 = scmp.eq.s32.totalorder %s1162_s17, 0  ;;  %p63_p3 = scmp.ne.s32.totalorder %s1146_s13, %s1142_s12 }
   0xc   : > { %s1593_s20 = smov (%p43_p0, %s41_s20), 0  ;;  %p64_p5 = scmp.eq.s32.totalorder %s808_s18, 0 }
   0xd   : > { %p1234_p4 = por %p58_p2, %p57_p1  ;;  %s45_s23 = ssub.s32 %s1158_s16, %s1593_s20 }
   0xe   : > { %p140_p6 = scmp.eq.s32.totalorder %s808_s18, 1  ;;  %p48_p7 = scmp.eq.s32.totalorder %s45_s23, 0 }
   0xf   : > { %p1240_p8 = por %p64_p5, %p63_p3  ;;  %p146_p10 = scmp.eq.s32.totalorder %s809_s19, 1 }
  0x10   : > { %p1244_p9 = por %p140_p6, %p57_p1  ;;  %p920_p13 = scmp.lt.s32.totalorder %s1162_s17, 2 }
  0x11   : > { %s1577_s24 = scalar_select %p1240_p8, 1, 0 }
  0x12   : > { %s1578_s25 = scalar_select %p1244_p9, 1, 0 }
  0x13   : > { %s1249_s26 = scalar_select %p48_p7, %s1150_s14, %s50_s21  }
  0x14   : > { %p1251_p11 = por %p146_p10, %p63_p3  ;;  %s1258_s28 = sand.u32 1, %s1150_s14  }
  0x15   : > { %s812_s29 = sshll.u32 %s1258_s28, 6  ;;  %s836_s30 = sshll.u32 %s1158_s16, 10 }
  0x16   : > { %s1579_s27 = scalar_select %p1251_p11, 1, 0 }
  0x17   : > { %s1265_s6 = scalar_lea.hbm %s1570_s0, %s836_s30  ;;  %s173_s7 = scalar_lea.vmem [#allocation3], %s812_s29 }
  0x18   : > { %s182_s8 = sshll.u32 %s173_s7, 4  ;;  %p1271_p0 = pnand %p920_p13, %p1234_p4  ;;  %s1267_s8 = int_to_ptr.vmem [resolvable:$true] %s182_s8 }
  0x19   : > { %s170_s10 = scalar_lea.sflag [#allocation4], %s1258_s28  ;;  %s1016_s11 = scalar_lea.hbm %s1265_s6, 1024 }
  0x1a   : > { %p1017_p2 = scmp.ne.s32.totalorder %s1265_s6, %s1016_s11  ;;  %p1018_p3 = pneg %p1271_p0 }
  0x1b   : > { %s1021_s21 = scalar_lea.hbm %s1570_s0, 2048  ;;  %p1022_p4 = scmp.lt.u32.totalorder %s1265_s6, %s1570_s0 }
  0x1c   : > { %p1019_p5 = pnand %p1018_p3, %p1017_p2  ;;  %p1023_p7 = scmp.lt.u32.totalorder %s1021_s21, %s1016_s11 }
  0x1d   : > { %p1025_p13 = scmp.lt.u32.totalorder %s1016_s11, %s1265_s6 }
  0x1e   : > { %p1020_p6 = pneg %p1019_p5  ;;  %p1024_p10 = por %p1023_p7, %p1022_p4 }
  0x20   : > { %p1026_p12 = por %p1025_p13, %p1024_p10 }
  0x22   : > { %p1027_p1 = pnand %p1026_p12, %p1020_p6 }
  0x24   : > { %1030 = shalt.err (!%p1027_p1)
}
  0x25   : > { %s1031_s29 = scalar_lea.vmem %s1267_s8, 1024  ;;  %s1164_s30 = smov [#allocation3]  }
  0x26   : > { %p1032_p2 = scmp.ne.s32.totalorder %s1267_s8, %s1031_s29  ;;  %s1036_s4 = sshll.u32 %s1164_s30, 4  ;;  %s1037_s4 = int_to_ptr.vmem [resolvable:$false] %s1036_s4 }
  0x27   : > { %s1038_s5 = scalar_lea.vmem %s1037_s4, 2048  ;;  %p1039_p9 = scmp.lt.s32.totalorder %s1267_s8, %s1037_s4 }
  0x28   : > { %p1034_p5 = pnand %p1032_p2, %p1018_p3  ;;  %p1040_p4 = scmp.lt.s32.totalorder %s1038_s5, %s1031_s29 }
  0x2a   : > { %p1035_p11 = pneg %p1034_p5  ;;  %p1041_p7 = por %p1040_p4, %p1039_p9 }
  0x2c   : > { %p1042_p10 = pnand %p1041_p7, %p1035_p11 }
  0x2e   : > { %1045 = shalt.err (!%p1042_p10)
}
  0x2f   : > { %s1165_s7 = smov 64   ;;  %s1166_s11 = smov 4  }
  0x30   : > { %912 = dma.hbm_to_vmem [thread:$0]  (!%p1271_p0), %s1265_s6, 1024, %s1267_s8, %s170_s10, %s1165_s7, %s1165_s7, %s1166_s11  }
  0x31   : > { %p214_p12 = scmp.lt.s32.totalorder %s1162_s17, 3  ;;  %s815_s18 = sshll.u32 %s1258_s28, 7 }
  0x32   : > { %s837_s19 = sshll.u32 %s1158_s16, 11  ;;  %p1581_p9 = scmp.ge.s32.totalorder %s1162_s17, 1 }
  0x33   : > { %s1316_s29 = scalar_lea.hbm %s1571_s1, %s837_s19  ;;  %s196_s30 = scalar_lea.vmem [#allocation6], %s815_s18 }
  0x34   : > { %p1309_p11 = pnand %p1581_p9, %p214_p12  ;;  %s206_s4 = sshll.u32 %s196_s30, 4  ;;  %s1318_s4 = int_to_ptr.vmem [resolvable:$true] %s206_s4 }
  0x35   : > { %s193_s6 = scalar_lea.sflag [#allocation7], %s1258_s28  ;;  %s1046_s8 = scalar_lea.hbm %s1316_s29, 2048 }
  0x36   : > { %p1047_p1 = scmp.ne.s32.totalorder %s1316_s29, %s1046_s8  ;;  %s1051_s7 = scalar_lea.hbm %s1571_s1, 4096 }
  0x37   : > { %p1052_p2 = scmp.lt.u32.totalorder %s1316_s29, %s1571_s1  ;;  %p1053_p5 = scmp.lt.u32.totalorder %s1051_s7, %s1046_s8 }
  0x38   : > { %p1049_p6 = pnand %p1047_p1, %p1018_p3  ;;  %p1055_p7 = scmp.lt.u32.totalorder %s1046_s8, %s1316_s29 }
  0x39   : > { %p1054_p4 = por %p1053_p5, %p1052_p2 }
  0x3a   : > { %p1050_p13 = pneg %p1049_p6 }
  0x3b   : > { %p1056_p10 = por %p1055_p7, %p1054_p4 }
  0x3d   : > { %p1057_p12 = pnand %p1056_p10, %p1050_p13 }
  0x3f   : > { %1060 = shalt.err (!%p1057_p12)
}
  0x40   : > { %s1061_s18 = scalar_lea.vmem %s1318_s4, 2048  ;;  %s1167_s22 = smov [#allocation6]  }
  0x41   : > { %p1062_p9 = scmp.ne.s32.totalorder %s1318_s4, %s1061_s18  ;;  %s1066_s23 = sshll.u32 %s1167_s22, 4  ;;  %s1067_s23 = int_to_ptr.vmem [resolvable:$false] %s1066_s23 }
  0x42   : > { %s1068_s30 = scalar_lea.vmem %s1067_s23, 4096  ;;  %p1069_p8 = scmp.lt.s32.totalorder %s1318_s4, %s1067_s23 }
  0x43   : > { %p1064_p1 = pnand %p1062_p9, %p1018_p3  ;;  %p1070_p2 = scmp.lt.s32.totalorder %s1068_s30, %s1061_s18 }
  0x45   : > { %p1065_p6 = pneg %p1064_p1  ;;  %p1071_p5 = por %p1070_p2, %p1069_p8 }
  0x47   : > { %p1072_p4 = pnand %p1071_p5, %p1065_p6 }
  0x49   : > { %1075 = shalt.err (!%p1072_p4)
}
  0x4a   : > { %s1168_s8 = smov 128   ;;  %s1169_s10 = smov 8  }
  0x4b   : > { %915 = dma.hbm_to_vmem [thread:$0]  (!%p1271_p0), %s1316_s29, 2048, %s1318_s4, %s193_s6, %s1168_s8, %s1168_s8, %s1169_s10  }
  0x4c   : > { %218 = sbr.rel (%p1309_p11) target bundleno = 536 (0x218), region = 32  ;;  %s1349_s5 = sand.u32 (!%p1309_p11), 1, %s1146_s13  }
  0x4d   : > { %s819_s7 = sshll.u32 (!%p1309_p11), %s1349_s5, 6  ;;  %s221_s11 = scalar_lea.sflag (!%p1309_p11), [#allocation4], %s1349_s5 }
  0x4e   : > { %s1353_s19 = scalar_lea.vmem (!%p1309_p11), [#allocation3], %s819_s7  ;;  %p1583_p8 = scmp.ne.s32.totalorder (!%p1309_p11), %s1577_s24, 0 }
  0x53   : > { %1129 = dma.done.wait (%p1583_p8), %s221_s11, 1024  }
  0x54   : > { %1131 = vsyncadd (%p1583_p8), %s221_s11, 4294966272  ;;  %s820_s28 = sshll.u32 %s1349_s5, 7  ;;  %s230_s9 = scalar_lea.sflag [#allocation7], %s1349_s5 }
  0x55   : > { %s1363_s21 = scalar_lea.vmem [#allocation6], %s820_s28 }
  0x56   : > { %1133 = dma.done.wait (%p1583_p8), %s230_s9, 2048  }
  0x57   : > { %1135 = vsyncadd (%p1583_p8), %s230_s9, 4294965248  ;;  %v976_v0 = vld [vmem:[%s1353_s19] sm:$0xff]   ;;  %v977_v1 = vld [vmem:[%s1353_s19 + $0x8] sm:$0xff]   ;;  %v537_v32 = vlaneseq  ;;  %s1468_s4 = scalar_lea.vmem [#allocation8], %s820_s28  ;;  %s838_s6 = sshll.u32 %s1154_s15, 11 }
  0x58   : > { %855 = vmatprep.subr.bf16.mxu0 %v976_v0  ;;  %887 = vmatprep.subr.bf16.mxu1 %v976_v0  ;;  %v978_v2 = vld [vmem:[%s1353_s19 + $0x10] sm:$0xff]   ;;  %v979_v3 = vld [vmem:[%s1353_s19 + $0x18] sm:$0xff]   ;;  %v301_v4 = vld [vmem:[%s1363_s21] sm:$0xff]  ;;  %s691_s18 = sshll.u32 %s1468_s4, 4  ;;  %s1516_s30 = scalar_lea.hbm %s1573_s3, %s838_s6  ;;  %s1518_s18 = int_to_ptr.vmem [resolvable:$true] %s691_s18 }
  0x59   : > { %856 = vmatpush3.bf16.msra.mxu0 %v976_v0  ;;  %895 = vmatpush3.bf16.msra.mxu1 %v976_v0  ;;  %v302_v5 = vld [vmem:[%s1363_s21 + $0x8] sm:$0xff]  ;;  %v309_v6 = vld [vmem:[%s1363_s21 + $0x40] sm:$0xff]  ;;  %v982_v12 = vld [vmem:[%s1353_s19 + $0x30] sm:$0xff]   ;;  %v538_v33 = vand.u32 127, %v537_v32  ;;  %s676_s15 = scalar_lea.sflag [#allocation5], %s1349_s5  ;;  %s1076_s8 = scalar_lea.vmem %s1518_s18, 2048 }
  0x5a   : > { %857 = vmatprep.subr.bf16.mxu0 %v977_v1  ;;  %888 = vmatprep.subr.bf16.mxu1 %v977_v1  ;;  %v317_v7 = vpack.c.bf16 %v302_v5, %v301_v4  ;;  %v310_v8 = vld [vmem:[%s1363_s21 + $0x48] sm:$0xff]  ;;  %v980_v10 = vld [vmem:[%s1353_s19 + $0x20] sm:$0xff]   ;;  %v983_v13 = vld [vmem:[%s1353_s19 + $0x38] sm:$0xff]   ;;  %p1077_p0 = scmp.ne.s32.totalorder %s1518_s18, %s1076_s8  ;;  %p1584_p3 = scmp.ne.s32.totalorder %s1578_s25, 0 }
  0x5b   : > { %v321_v9 = vpack.c.bf16 %v310_v8, %v309_v6  ;;  %v981_v11 = vld [vmem:[%s1353_s19 + $0x28] sm:$0xff]   ;;  %v303_v14 = vld [vmem:[%s1363_s21 + $0x10] sm:$0xff]  ;;  %v304_v15 = vld [vmem:[%s1363_s21 + $0x18] sm:$0xff]  ;;  %vm539_vm0 = vcmp.eq.s32.totalorder %v538_v33, 32  ;;  %s1170_s10 = smov [#allocation8]  }
  0x5c   : > { %871 = vmatprep.mubr.bf16.mxu0 %v317_v7  ;;  %v311_v16 = vld [vmem:[%s1363_s21 + $0x50] sm:$0xff]  ;;  %v312_v17 = vld [vmem:[%s1363_s21 + $0x58] sm:$0xff]  ;;  %v305_v18 = vld [vmem:[%s1363_s21 + $0x20] sm:$0xff]  ;;  %v318_v22 = vpack.c.bf16 %v304_v15, %v303_v14  ;;  %p1078_p11 = pnand %p1077_p0, %p1584_p3  ;;  %s1080_s7 = sshll.u32 %s1170_s10, 4  ;;  %s1081_s7 = int_to_ptr.vmem [resolvable:$false] %s1080_s7 }
  0x5d   : > { %858 = vmatpush3.bf16.msra.mxu0 %v977_v1  ;;  %896 = vmatpush3.bf16.msra.mxu1 %v977_v1  ;;  %v306_v19 = vld [vmem:[%s1363_s21 + $0x28] sm:$0xff]  ;;  %v313_v20 = vld [vmem:[%s1363_s21 + $0x60] sm:$0xff]  ;;  %v322_v23 = vpack.c.bf16 %v312_v17, %v311_v16  ;;  %v307_v26 = vld [vmem:[%s1363_s21 + $0x30] sm:$0xff]  ;;  %s1082_s11 = scalar_lea.vmem %s1081_s7, 4096  ;;  %p1083_p7 = scmp.lt.s32.totalorder %s1518_s18, %s1081_s7 }
  0x5e   : > { %859 = vmatprep.subr.bf16.mxu0 %v978_v2  ;;  %889 = vmatprep.subr.bf16.mxu1 %v978_v2  ;;  %v314_v21 = vld [vmem:[%s1363_s21 + $0x68] sm:$0xff]  ;;  %v319_v24 = vpack.c.bf16 %v306_v19, %v305_v18  ;;  %v308_v27 = vld [vmem:[%s1363_s21 + $0x38] sm:$0xff]  ;;  %v315_v28 = vld [vmem:[%s1363_s21 + $0x70] sm:$0xff]  ;;  %p1079_p13 = pneg %p1078_p11  ;;  %p1084_p10 = scmp.lt.s32.totalorder %s1082_s11, %s1076_s8 }
  0x5f   : > { %879 = vmatprep.mubr.bf16.mxu1 %v321_v9  ;;  %v323_v25 = vpack.c.bf16 %v314_v21, %v313_v20  ;;  %v316_v29 = vld [vmem:[%s1363_s21 + $0x78] sm:$0xff]  ;;  %v320_v30 = vpack.c.bf16 %v308_v27, %v307_v26  ;;  %v1460_v17 = vld [vmem:[%s1572_s2] ss:$0 sm:$0xff] }
  0x60   : > { %v324_v31 = vpack.c.bf16 %v316_v29, %v315_v28  ;;  %p1085_p12 = por %p1084_p10, %p1083_p7 }
  0x61   : > { %860 = vmatpush3.bf16.msra.mxu0 %v978_v2  ;;  %897 = vmatpush3.bf16.msra.mxu1 %v978_v2 }
  0x62   : > { %861 = vmatprep.subr.bf16.mxu0 %v979_v3  ;;  %890 = vmatprep.subr.bf16.mxu1 %v979_v3  ;;  %p1086_p9 = pnand %p1085_p12, %p1079_p13 }
  0x65   : > { %862 = vmatpush3.bf16.msra.mxu0 %v979_v3  ;;  %898 = vmatpush3.bf16.msra.mxu1 %v979_v3 }
  0x66   : > { %863 = vmatprep.subr.bf16.mxu0 %v980_v10  ;;  %891 = vmatprep.subr.bf16.mxu1 %v980_v10 }
  0x69   : > { %864 = vmatpush3.bf16.msra.mxu0 %v980_v10  ;;  %899 = vmatpush3.bf16.msra.mxu1 %v980_v10 }
  0x6a   : > { %865 = vmatprep.subr.bf16.mxu0 %v981_v11  ;;  %892 = vmatprep.subr.bf16.mxu1 %v981_v11 }
  0x6d   : > { %866 = vmatpush3.bf16.msra.mxu0 %v981_v11  ;;  %900 = vmatpush3.bf16.msra.mxu1 %v981_v11 }
  0x6e   : > { %867 = vmatprep.subr.bf16.mxu0 %v982_v12  ;;  %893 = vmatprep.subr.bf16.mxu1 %v982_v12 }
  0x71   : > { %868 = vmatpush3.bf16.msra.mxu0 %v982_v12  ;;  %901 = vmatpush3.bf16.msra.mxu1 %v982_v12 }
  0x72   : > { %869 = vmatprep.subr.bf16.mxu0 %v983_v13  ;;  %894 = vmatprep.subr.bf16.mxu1 %v983_v13 }
  0x75   : > { %870 = vmatpush3.bf16.msra.mxu0 %v983_v13  ;;  %902 = vmatpush3.bf16.msra.mxu1 %v983_v13 }
  0x78   : > { %872 = vmatmul.mubr.bf16.vlgmr.msra.gmra.mrb[0].mxu0 %v318_v22  ;;  %880 = vmatmul.mubr.bf16.vlgmr.msra.gmra.mrb[0].mxu1 %v322_v23 }
  0x79   : > { %875 = vmatprep.mubr.bf16.mxu0 %v319_v24  ;;  %883 = vmatprep.mubr.bf16.mxu1 %v323_v25 }
  0x80   : > { %876 = vmatmul.mubr.bf16.gmra.mrb[4].mxu0 %v320_v30  ;;  %884 = vmatmul.mubr.bf16.gmra.mrb[4].mxu1 %v324_v31 }
 0x14b   : > { %v1393_v34 = vpop.f32.mrb[0].mxu0  ;;  %v1395_v35 = vpop.f32.mrb[0].mxu1 }
 0x14c   : > { %v1397_v36 = vpop.f32.mrb[1].mxu0  ;;  %v1399_v37 = vpop.f32.mrb[1].mxu1  ;;  %v550_v38 = vsel %vm539_vm0, %v1395_v35, 0.0  ;;  %v542_v39 = vsel %vm539_vm0, %v1393_v34, 0.0 }
 0x14d   : > { %576 = vadd.xlane.f32.xlu0 %v550_v38  ;;  %v1405_v40 = vpop.f32.mrb[2].mxu1  ;;  %560 = vadd.xlane.f32.xlu1 %v542_v39  ;;  %v1407_v41 = vpop.f32.mrb[2].mxu0  ;;  %v540_v44 = vsel %vm539_vm0, %v1397_v36, 0.0  ;;  %v548_v48 = vsel %vm539_vm0, %v1399_v37, 0.0 }
 0x14e   : > { %v1409_v42 = vpop.f32.mrb[3].mxu0  ;;  %v1411_v43 = vpop.f32.mrb[3].mxu1  ;;  %v543_v45 = vsel %vm539_vm0, %v1407_v41, 0.0  ;;  %v551_v49 = vsel %vm539_vm0, %v1405_v40, 0.0 }
 0x14f   : > { %v549_v56 = vsel %vm539_vm0, %v1411_v43, 0.0  ;;  %v541_v57 = vsel %vm539_vm0, %v1409_v42, 0.0 }
 0x151   : > { %556 = vadd.xlane.f32.xlu0 %v540_v44  ;;  %562 = vadd.xlane.f32.xlu1 %v543_v45 }
 0x153   : > { %v1417_v46 = vpop.f32.mrb[4].mxu0  ;;  %v1419_v47 = vpop.f32.mrb[4].mxu1 }
 0x154   : > { %v1425_v50 = vpop.f32.mrb[5].mxu0  ;;  %v1427_v51 = vpop.f32.mrb[5].mxu1  ;;  %v546_v58 = vsel %vm539_vm0, %v1417_v46, 0.0  ;;  %v554_v0 = vsel %vm539_vm0, %v1419_v47, 0.0 }
 0x155   : > { %572 = vadd.xlane.f32.xlu0 %v548_v48  ;;  %578 = vadd.xlane.f32.xlu1 %v551_v49  ;;  %v1429_v52 = vpop.f32.mrb[6].mxu0  ;;  %v1431_v53 = vpop.f32.mrb[6].mxu1  ;;  %v544_v60 = vsel %vm539_vm0, %v1425_v50, 0.0  ;;  %v552_v62 = vsel %vm539_vm0, %v1427_v51, 0.0 }
 0x156   : > { %v1433_v54 = vpop.f32.mrb[7].mxu0  ;;  %v1435_v55 = vpop.f32.mrb[7].mxu1  ;;  %v547_v59 = vsel %vm539_vm0, %v1429_v52, 0.0  ;;  %v555_v1 = vsel %vm539_vm0, %v1431_v53, 0.0 }
 0x157   : > { %v545_v61 = vsel %vm539_vm0, %v1433_v54, 0.0  ;;  %v553_v63 = vsel %vm539_vm0, %v1435_v55, 0.0 }
 0x159   : > { %574 = vadd.xlane.f32.xlu1 %v549_v56  ;;  %558 = vadd.xlane.f32.xlu0 %v541_v57 }
 0x15d   : > { %568 = vadd.xlane.f32.xlu0 %v546_v58  ;;  %570 = vadd.xlane.f32.xlu1 %v547_v59 }
 0x161   : > { %564 = vadd.xlane.f32.xlu0 %v544_v60  ;;  %566 = vadd.xlane.f32.xlu1 %v545_v61 }
 0x165   : > { %580 = vadd.xlane.f32.xlu0 %v552_v62  ;;  %582 = vadd.xlane.f32.xlu1 %v553_v63 }
 0x169   : > { %584 = vadd.xlane.f32.xlu0 %v554_v0  ;;  %586 = vadd.xlane.f32.xlu1 %v555_v1 }
 0x1da   : > { %v577_v2 = vpop.xlane.xlu0 %576  ;;  %v561_v3 = vpop.xlane.xlu1 %560 }
 0x1db   : > { %v598_v4 = vadd.f32 1.0, %v577_v2  ;;  %v590_v5 = vadd.f32 1.0, %v561_v3 }
 0x1dd   : > { %984 = vrcp.f32 %v598_v4 }
 0x1de   : > { %986 = vrcp.f32 %v590_v5  ;;  %v557_v6 = vpop.xlane.xlu0 %556  ;;  %v563_v7 = vpop.xlane.xlu1 %562 }
 0x1df   : > { %v588_v8 = vadd.f32 1.0, %v557_v6  ;;  %v591_v9 = vadd.f32 1.0, %v563_v7 }
 0x1e1   : > { %988 = vrcp.f32 %v588_v8 }
 0x1e2   : > { %990 = vrcp.f32 %v591_v9  ;;  %v573_v10 = vpop.xlane.xlu0 %572  ;;  %v579_v11 = vpop.xlane.xlu1 %578 }
 0x1e3   : > { %v596_v12 = vadd.f32 1.0, %v573_v10  ;;  %v599_v13 = vadd.f32 1.0, %v579_v11 }
 0x1e5   : > { %992 = vrcp.f32 %v596_v12 }
 0x1e6   : > { %994 = vrcp.f32 %v599_v13  ;;  %v575_v14 = vpop.xlane.xlu1 %574  ;;  %v559_v15 = vpop.xlane.xlu0 %558 }
 0x1e7   : > { %v985_v16 = vpop.eup %984  ;;  %v597_v18 = vadd.f32 1.0, %v575_v14  ;;  %v589_v19 = vadd.f32 1.0, %v559_v15 }
 0x1e8   : > { %v987_v20 = vpop.eup %986  ;;  %v630_v21 = vmul.f32 %v985_v16, %v1395_v35 }
 0x1e9   : > { %v622_v22 = vmul.f32 %v987_v20, %v1393_v34  ;;  %996 = vrcp.f32 %v597_v18 }
 0x1ea   : > { %v653_v23 = vadd.f32 %v1460_v17, %v630_v21  ;;  %998 = vrcp.f32 %v589_v19  ;;  %v569_v24 = vpop.xlane.xlu0 %568  ;;  %v571_v25 = vpop.xlane.xlu1 %570 }
 0x1eb   : > { %v989_v26 = vpop.eup %988  ;;  %v645_v27 = vadd.f32 %v1460_v17, %v622_v22  ;;  %v594_v28 = vadd.f32 1.0, %v569_v24  ;;  %v595_v29 = vadd.f32 1.0, %v571_v25 }
 0x1ec   : > { %v991_v30 = vpop.eup %990  ;;  %669 = vst [vmem:[%s1468_s4 + $0x50] sm:$0xff] %v653_v23  ;;  %v620_v31 = vmul.f32 %v989_v26, %v1397_v36 }
 0x1ed   : > { %661 = vst [vmem:[%s1468_s4 + $0x10] sm:$0xff] %v645_v27  ;;  %v623_v32 = vmul.f32 %v991_v30, %v1407_v41  ;;  %1000 = vrcp.f32 %v594_v28 }
 0x1ee   : > { %v643_v33 = vadd.f32 %v1460_v17, %v620_v31  ;;  %1002 = vrcp.f32 %v595_v29  ;;  %v565_v34 = vpop.xlane.xlu0 %564  ;;  %v567_v35 = vpop.xlane.xlu1 %566 }
 0x1ef   : > { %v993_v38 = vpop.eup %992  ;;  %v646_v39 = vadd.f32 %v1460_v17, %v623_v32  ;;  %v592_v44 = vadd.f32 1.0, %v565_v34  ;;  %v593_v45 = vadd.f32 1.0, %v567_v35 }
 0x1f0   : > { %v995_v48 = vpop.eup %994  ;;  %659 = vst [vmem:[%s1468_s4] sm:$0xff] %v643_v33  ;;  %v628_v36 = vmul.f32 %v993_v38, %v1399_v37 }
 0x1f1   : > { %662 = vst [vmem:[%s1468_s4 + $0x18] sm:$0xff] %v646_v39  ;;  %v631_v41 = vmul.f32 %v995_v48, %v1405_v40  ;;  %1004 = vrcp.f32 %v592_v44 }
 0x1f2   : > { %v651_v49 = vadd.f32 %v1460_v17, %v628_v36  ;;  %1006 = vrcp.f32 %v593_v45  ;;  %v581_v56 = vpop.xlane.xlu0 %580  ;;  %v583_v57 = vpop.xlane.xlu1 %582 }
 0x1f3   : > { %v997_v58 = vpop.eup %996  ;;  %v654_v59 = vadd.f32 %v1460_v17, %v631_v41  ;;  %v600_v60 = vadd.f32 1.0, %v581_v56  ;;  %v601_v61 = vadd.f32 1.0, %v583_v57 }
 0x1f4   : > { %v999_v62 = vpop.eup %998  ;;  %667 = vst [vmem:[%s1468_s4 + $0x40] sm:$0xff] %v651_v49  ;;  %v629_v37 = vmul.f32 %v997_v58, %v1411_v43 }
 0x1f5   : > { %670 = vst [vmem:[%s1468_s4 + $0x58] sm:$0xff] %v654_v59  ;;  %v621_v40 = vmul.f32 %v999_v62, %v1409_v42  ;;  %1008 = vrcp.f32 %v600_v60 }
 0x1f6   : > { %v652_v63 = vadd.f32 %v1460_v17, %v629_v37  ;;  %1010 = vrcp.f32 %v601_v61  ;;  %v585_v0 = vpop.xlane.xlu0 %584  ;;  %v587_v1 = vpop.xlane.xlu1 %586 }
 0x1f7   : > { %v1001_v2 = vpop.eup %1000  ;;  %v644_v3 = vadd.f32 %v1460_v17, %v621_v40  ;;  %v602_v4 = vadd.f32 1.0, %v585_v0  ;;  %v603_v5 = vadd.f32 1.0, %v587_v1 }
 0x1f8   : > { %v1003_v6 = vpop.eup %1002  ;;  %668 = vst [vmem:[%s1468_s4 + $0x48] sm:$0xff] %v652_v63  ;;  %v626_v43 = vmul.f32 %v1001_v2, %v1417_v46 }
 0x1f9   : > { %660 = vst [vmem:[%s1468_s4 + $0x8] sm:$0xff] %v644_v3  ;;  %v627_v42 = vmul.f32 %v1003_v6, %v1429_v52  ;;  %1012 = vrcp.f32 %v602_v4 }
 0x1fa   : > { %v649_v7 = vadd.f32 %v1460_v17, %v626_v43  ;;  %1014 = vrcp.f32 %v603_v5 }
 0x1fb   : > { %v1005_v8 = vpop.eup %1004  ;;  %v650_v9 = vadd.f32 %v1460_v17, %v627_v42 }
 0x1fc   : > { %v1007_v10 = vpop.eup %1006  ;;  %665 = vst [vmem:[%s1468_s4 + $0x30] sm:$0xff] %v649_v7  ;;  %v624_v11 = vmul.f32 %v1005_v8, %v1425_v50 }
 0x1fd   : > { %666 = vst [vmem:[%s1468_s4 + $0x38] sm:$0xff] %v650_v9  ;;  %v625_v46 = vmul.f32 %v1007_v10, %v1433_v54 }
 0x1fe   : > { %v647_v52 = vadd.f32 %v1460_v17, %v624_v11 }
 0x1ff   : > { %v1009_v12 = vpop.eup %1008  ;;  %v648_v13 = vadd.f32 %v1460_v17, %v625_v46 }
 0x200   : > { %v1011_v14 = vpop.eup %1010  ;;  %663 = vst [vmem:[%s1468_s4 + $0x20] sm:$0xff] %v647_v52  ;;  %v632_v15 = vmul.f32 %v1009_v12, %v1427_v51 }
 0x201   : > { %664 = vst [vmem:[%s1468_s4 + $0x28] sm:$0xff] %v648_v13  ;;  %v633_v16 = vmul.f32 %v1011_v14, %v1435_v55 }
 0x202   : > { %v655_v50 = vadd.f32 %v1460_v17, %v632_v15 }
 0x203   : > { %v1013_v18 = vpop.eup %1012  ;;  %v656_v54 = vadd.f32 %v1460_v17, %v633_v16 }
 0x204   : > { %v1015_v19 = vpop.eup %1014  ;;  %671 = vst [vmem:[%s1468_s4 + $0x60] sm:$0xff] %v655_v50  ;;  %v634_v20 = vmul.f32 %v1013_v18, %v1419_v47 }
 0x205   : > { %672 = vst [vmem:[%s1468_s4 + $0x68] sm:$0xff] %v656_v54  ;;  %v635_v51 = vmul.f32 %v1015_v19, %v1431_v53 }
 0x206   : > { %v657_v21 = vadd.f32 %v1460_v17, %v634_v20 }
 0x207   : > { %v658_v55 = vadd.f32 %v1460_v17, %v635_v51 }
 0x208   : > { %673 = vst [vmem:[%s1468_s4 + $0x70] sm:$0xff] %v657_v21 }
 0x209   : > { %674 = vst [vmem:[%s1468_s4 + $0x78] sm:$0xff] %v658_v55 }
 0x20a   : > { %1089 = shalt.err (!%p1086_p9)
}
 0x20b   : > { %s1090_s19 = scalar_lea.hbm %s1516_s30, 2048  ;;  %s1094_s21 = scalar_lea.hbm %s1573_s3, 4096 }
 0x20c   : > { %p1091_p1 = scmp.ne.s32.totalorder %s1516_s30, %s1090_s19  ;;  %p1095_p5 = scmp.lt.u32.totalorder %s1516_s30, %s1573_s3 }
 0x20d   : > { %p1096_p4 = scmp.lt.u32.totalorder %s1094_s21, %s1090_s19  ;;  %p1098_p0 = scmp.lt.u32.totalorder %s1090_s19, %s1516_s30 }
 0x20e   : > { %p1092_p6 = pnand %p1091_p1, %p1584_p3 }
 0x20f   : > { %p1097_p8 = por %p1096_p4, %p1095_p5 }
 0x210   : > { %p1093_p2 = pneg %p1092_p6 }
 0x211   : > { %p1099_p11 = por %p1098_p0, %p1097_p8 }
 0x213   : > { %p1100_p13 = pnand %p1099_p11, %p1093_p2 }
 0x215   : > { %1103 = shalt.err (!%p1100_p13)
}
 0x216   : > { %s1171_s4 = smov 128   ;;  %s1172_s6 = smov 8  }
 0x217   : > { %907 = dma.vmem_to_hbm [thread:$0]  (%p1584_p3), %s1518_s18, 2048, %s1516_s30, %s676_s15, %s1171_s4, %s1171_s4, %s1172_s6  }
 0x218 PF: > { %s706_s22 = sand.u32 1, %s1142_s12   ;;  %p1585_p7 = scmp.ne.s32.totalorder %s1579_s27, 0 }
 0x219   : > { %p1586_p10 = scmp.ge.s32.totalorder %s1162_s17, 2  ;;  %s707_s23 = scalar_lea.sflag [#allocation5], %s706_s22 }
 0x21b   : > { %p917_p12 = pnand %p1586_p10, %p1585_p7 }
 0x21d   : > { %1137 = dma.done.wait (!%p917_p12), %s707_s23, 2048  }
 0x21e   : > { %1139 = vsyncadd (!%p917_p12), %s707_s23, 4294965248  ;;  %s22_s17 = sadd.s32 1, %s1162_s17   ;;  %s1587_s12 = smov %s1146_s13 }
 0x21f   : > { %p19_p9 = scmp.ge.s32.totalorder %s22_s17, 4   ;;  %s1588_s13 = smov %s1150_s14 }
 0x220   : > { %s1589_s14 = smov %s1249_s26  ;;  %s1590_s15 = smov %s1158_s16 }
 0x221   : > { %s1591_s16 = smov %s1593_s20  ;;  %21 = sbr.rel (!%p19_p9) target bundleno = 8 (0x8), region = 98 }
 0x228   :  { %712 = vsyncpa [#allocation4], 1 }
 0x229   :  { %714 = vsyncpa [#allocation4 + $0x1], 1 }
 0x22a   :  { %715 = vsyncpa [#allocation7], 1 }
 0x22b   :  { %717 = vsyncpa [#allocation7 + $0x1], 1 }
 0x22c   :  { %718 = vsyncpa [#allocation5], 1 }
 0x22d   :  { %720 = vsyncpa [#allocation5 + $0x1], 1 }

</bundles_post_ra>
